<compile_context>
chip_gen: v7x
topology: tpu7x:2x2x1
jax: 0.10.0
libtpu: 0.0.40
codegen_flags: <defaults>
</compile_context>

<pallas_src>
import jax
import jax.numpy as jnp
from jax import lax
from jax.experimental import pallas as pl
from jax.experimental.pallas import tpu as pltpu


def _round_up(x: int, m: int) -> int:
    return ((x + m - 1) // m) * m


# --------------------------------------------------------------------------
# Kernel: scores tile = q_tile @ E_tile^T, single fused MXU contraction over 2R.
#   q_ref: [tb, 2R]   (query = [lhs_re*rel_re - lhs_im*rel_im | lhs_re*rel_im + lhs_im*rel_re])
#   e_ref: [tn, 2R]   (entity table rows, [real | imag] in the lane dim)
#   o_ref: [tb, tn]   float32 scores
# --------------------------------------------------------------------------
def _scores_kernel(q_ref, e_ref, o_ref):
    o_ref[...] = lax.dot_general(
        q_ref[...],
        e_ref[...],
        dimension_numbers=(((1,), (1,)), ((), ())),   # contract the 2R lane dim
        preferred_element_type=jnp.float32,
    ).astype(o_ref.dtype)


def complex_scores(q, entity_table, *, tile_b=128, tile_n=512, compute_dtype=None):
    """scores[b, n] = sum_k q[b, k] * entity_table[n, k]  (k runs over 2*rank)."""
    B, two_rank = q.shape
    N, two_rank_e = entity_table.shape
    assert two_rank == two_rank_e, "query / entity embedding widths must match"

    if compute_dtype is not None and compute_dtype != q.dtype:
        # Stream inputs narrower (e.g. bf16); MXU still accumulates in f32.
        q = q.astype(compute_dtype)
        entity_table = entity_table.astype(compute_dtype)

    # Tile sizes: sublane-aligned batch tile, lane-dense (>=128) entity tile.
    tb = min(tile_b, _round_up(B, 8))
    tn = min(tile_n, _round_up(N, 128))
    Bp = _round_up(B, tb)
    Np = _round_up(N, tn)

    if Bp != B:
        q = jnp.pad(q, ((0, Bp - B), (0, 0)))
    if Np != N:
        entity_table = jnp.pad(entity_table, ((0, Np - N), (0, 0)))

    grid = (Bp // tb, Np // tn)

    out = pl.pallas_call(
        _scores_kernel,
        out_shape=jax.ShapeDtypeStruct((Bp, Np), jnp.float32),
        grid_spec=pltpu.PrefetchScalarGridSpec(
            num_scalar_prefetch=0,
            grid=grid,
            in_specs=[
                pl.BlockSpec((tb, two_rank), lambda i, j: (i, 0)),   # query tile
                pl.BlockSpec((tn, two_rank), lambda i, j: (j, 0)),   # entity tile
            ],
            out_specs=pl.BlockSpec((tb, tn), lambda i, j: (i, j)),
        ),
        compiler_params=pltpu.CompilerParams(
            # Both axes independent -> shard across TensorCores (v7x megacore).
            dimension_semantics=("parallel", "parallel"),
            # Tiles are small (<2 MiB double-buffered); default scoped VMEM is
            # plenty on v5e/v6e/v7x, so no explicit vmem_limit_bytes needed.
        ),
    )(q, entity_table)

    if Bp != B or Np != N:
        out = out[:B, :N]   # drop zero-padded batch rows / entity columns
    return out


# --------------------------------------------------------------------------
# ComplEx module (parameters + forward) in JAX; hot path (scores) in Pallas.
# --------------------------------------------------------------------------
class ComplExJAX:
    def __init__(self, sizes, rank, init_size=0.001, key=None, compute_dtype=None):
        self.sizes = sizes
        self.rank = rank
        self.compute_dtype = compute_dtype   # None -> f32; jnp.bfloat16 for bf16 streaming
        if key is None:
            key = jax.random.PRNGKey(0)
        k0, k1 = jax.random.split(key)
        # nn.Embedding default init ~ N(0, 1), scaled by init_size.
        self.entity_emb = (
            jax.random.normal(k0, (sizes[0], 2 * rank), dtype=jnp.float32) * init_size
        )
        self.rel_emb = (
            jax.random.normal(k1, (sizes[1], 2 * rank), dtype=jnp.float32) * init_size
        )

    def forward(self, x):
        R = self.rank
        # Embedding gathers + complex query product + factor norms: plain JAX
        # (all fuse into the gather; trivial VPU work not worth a kernel launch).
        lhs = jnp.take(self.entity_emb, x[:, 0], axis=0)
        rel = jnp.take(self.rel_emb, x[:, 1], axis=0)
        rhs = jnp.take(self.entity_emb, x[:, 2], axis=0)
        lre, lim = lhs[:, :R], lhs[:, R:]
        rre, rim = rel[:, :R], rel[:, R:]
        hre, him = rhs[:, :R], rhs[:, R:]

        # Fused complex query: since E is stored as [real | imag] along lanes,
        # scores = [q_re | q_im] @ E.T  -- one contraction over 2R.
        q = jnp.concatenate([lre * rre - lim * rim, lre * rim + lim * rre], axis=1)

        scores = complex_scores(q, self.entity_emb, compute_dtype=self.compute_dtype)

        factors = (
            jnp.sqrt(lre * lre + lim * lim),
            jnp.sqrt(rre * rre + rim * rim),
            jnp.sqrt(hre * hre + him * him),
        )
        return scores, factors, None


# --------------------------------------------------------------------------
# Pure-JAX reference for correctness check (matches the PyTorch forward).
# --------------------------------------------------------------------------
def reference_forward(model, x):
    R = model.rank
    lhs = jnp.take(model.entity_emb, x[:, 0], axis=0)
    rel = jnp.take(model.rel_emb, x[:, 1], axis=0)
    rhs = jnp.take(model.entity_emb, x[:, 2], axis=0)
    lre, lim = lhs[:, :R], lhs[:, R:]
    rre, rim = rel[:, :R], rel[:, R:]
    hre, him = rhs[:, :R], rhs[:, R:]
    ere, eim = model.entity_emb[:, :R], model.entity_emb[:, R:]
    scores = (lre * rre - lim * rim) @ ere.T + (lre * rim + lim * rre) @ eim.T
    factors = (
        jnp.sqrt(lre**2 + lim**2),
        jnp.sqrt(rre**2 + rim**2),
        jnp.sqrt(hre**2 + him**2),
    )
    return scores, factors, None


def _make_queries(key, B, n_ent, n_rel):
    klhs, krel, krhs = jax.random.split(key, 3)
    return jnp.stack(
        [
            jax.random.randint(klhs, (B,), 0, n_ent),
            jax.random.randint(krel, (B,), 0, n_rel),
            jax.random.randint(krhs, (B,), 0, n_ent),
        ],
        axis=1,
    ).astype(jnp.int32)


if __name__ == "__main__":
    key = jax.random.PRNGKey(0)

    # ---- Test 1: aligned shapes, f32 path -------------------------------
    sizes = (256, 64, 256, 16)   # (n_entities, n_relations, n_entities, n_timestamps)
    rank = 64
    B = 8

    model = ComplExJAX(sizes, rank, init_size=0.001, key=key)
    x = _make_queries(jax.random.PRNGKey(42), B, sizes[0], sizes[1])

    fwd = jax.jit(model.forward)
    scores, factors, third = fwd(x)
    jax.block_until_ready(scores)
    jax.block_until_ready(factors)

    ref_scores, ref_factors, _ = reference_forward(model, x)
    assert scores.shape == (B, sizes[0])
    assert all(f.shape == (B, rank) for f in factors)
    assert jnp.allclose(scores, ref_scores, atol=1e-6, rtol=1e-5)
    for f, rf in zip(factors, ref_factors):
        assert jnp.allclose(f, rf, atol=1e-6, rtol=1e-5)
    assert third is None

    # ---- Test 2: non-tile-aligned N and B (exercises padding + multi-tile) --
    sizes2 = (700, 50, 700, 16)
    B2 = 10
    model2 = ComplExJAX(sizes2, rank, init_size=0.001, key=jax.random.PRNGKey(7))
    x2 = _make_queries(jax.random.PRNGKey(43), B2, sizes2[0], sizes2[1])
    scores2, factors2, _ = jax.jit(model2.forward)(x2)
    jax.block_until_ready(scores2)
    ref_scores2, ref_factors2, _ = reference_forward(model2, x2)
    assert scores2.shape == (B2, sizes2[0])
    assert jnp.allclose(scores2, ref_scores2, atol=1e-6, rtol=1e-5)
    for f, rf in zip(factors2, ref_factors2):
        assert jnp.allclose(f, rf, atol=1e-6, rtol=1e-5)

    # ---- Test 3: bf16 streaming of q / entity table (f32 accumulation) ------
    model_bf16 = ComplExJAX(sizes, rank, init_size=0.001, key=key,
                            compute_dtype=jnp.bfloat16)
    scores_bf16, _, _ = jax.jit(model_bf16.forward)(x)
    jax.block_until_ready(scores_bf16)
    assert scores_bf16.shape == (B, sizes[0])
    assert bool(jnp.all(jnp.isfinite(scores_bf16)))
    # bf16-input reference (same inputs, f32 accumulation) should match closely.
    lhs = jnp.take(model.entity_emb, x[:, 0], axis=0)
    rel = jnp.take(model.rel_emb, x[:, 1], axis=0)
    lre, lim = lhs[:, :rank], lhs[:, rank:]
    rre, rim = rel[:, :rank], rel[:, rank:]
    q_f32 = jnp.concatenate([lre * rre - lim * rim, lre * rim + lim * rre], axis=1)
    ref_bf16 = jnp.dot(q_f32.astype(jnp.bfloat16),
                       model.entity_emb.astype(jnp.bfloat16).T,
                       preferred_element_type=jnp.float32)
    assert jnp.allclose(scores_bf16, ref_bf16, atol=1e-9, rtol=2e-2)
    # ... and be a reasonable approximation of the exact f32 result.
    assert jnp.allclose(scores_bf16, ref_scores, atol=1e-8, rtol=5e-2)

    print("KERNEL_OK")
</pallas_src>

<mosaic_0001>
module attributes {stable_mosaic.version = 11 : i64} {
  func.func @_scores_kernel(%arg0: i32, %arg1: i32, %arg2: memref<8x128xf32, #tpu.memory_space<vmem>>, %arg3: memref<256x128xf32, #tpu.memory_space<vmem>>, %arg4: memref<8x256xf32, #tpu.memory_space<vmem>>) attributes {dimension_semantics = [#tpu.dimension_semantics<parallel>, #tpu.dimension_semantics<parallel>], iteration_bounds = array<i64: 1, 1>, scalar_prefetch = 0 : i64, scratch_operands = 0 : i64, tpu.core_type = #tpu.core_type<tc>, window_params = [{transform_indices = @transform_0, window_bounds = array<i64: 8, 128>}, {transform_indices = @transform_1, window_bounds = array<i64: 256, 128>}, {transform_indices = @transform_2, window_bounds = array<i64: 8, 256>}]} {
    %c0 = arith.constant 0 : index
    %c0_0 = arith.constant 0 : index
    %0 = vector.load %arg2[%c0, %c0_0] : memref<8x128xf32, #tpu.memory_space<vmem>>, vector<8x128xf32>
    %c0_1 = arith.constant 0 : index
    %c0_2 = arith.constant 0 : index
    %1 = vector.load %arg3[%c0_1, %c0_2] : memref<256x128xf32, #tpu.memory_space<vmem>>, vector<256x128xf32>
    %cst = arith.constant dense<0.000000e+00> : vector<8x256xf32>
    %2 = tpu.matmul %0, %1, %cst {dimension_numbers = #tpu.dot_dimension_numbers<[1], [1], [0], [0], [0, 0, 1, 0], [], []>} : vector<8x128xf32>, vector<256x128xf32>, vector<8x256xf32> -> vector<8x256xf32>
    %c0_3 = arith.constant 0 : index
    %c0_4 = arith.constant 0 : index
    %3 = vector.load %arg4[%c0_3, %c0_4] : memref<8x256xf32, #tpu.memory_space<vmem>>, vector<8x256xf32>
    tpu.vector_store %arg4[%c0_3, %c0_4], %2 {strides = array<i32>} : memref<8x256xf32, #tpu.memory_space<vmem>>, vector<8x256xf32>,
    return
  }
  func.func @transform_0(%arg0: i32, %arg1: i32) -> (i32, i32) {
    %c0_i32 = arith.constant 0 : i32
    %c0_i32_0 = arith.constant 0 : i32
    return %arg0, %c0_i32 : i32, i32
  }
  func.func @transform_1(%arg0: i32, %arg1: i32) -> (i32, i32) {
    %c0_i32 = arith.constant 0 : i32
    %c0_i32_0 = arith.constant 0 : i32
    return %arg1, %c0_i32 : i32, i32
  }
  func.func @transform_2(%arg0: i32, %arg1: i32) -> (i32, i32) {
    %c0_i32 = arith.constant 0 : i32
    return %arg0, %arg1 : i32, i32
  }
}

</mosaic_0001>

<bundles_post_ra>
// kernel: forward.1
= control target key start
LH: loop header
LB: loop body
LE: loop exit
PB: predicated region body
PF: predicated region fallthrough
CT: control target
= control target key end

     0   :  { %s350_s0 = inlined_call_operand.vmem [shape: f32[8,128], index: 0, kind: input, shape index: {}]   ;;  %s351_s1 = inlined_call_operand.vmem [shape: f32[256,128], index: 1, kind: input, shape index: {}]   ;;  %s352_s2 = inlined_call_operand.hbm [shape: f32[8,256], index: 2, kind: output, shape index: {}]  }
   0x1   :  { %v29_v0 = vld [vmem:[%s351_s1 + $0x80] sm:$0xff]  ;;  %v30_v1 = vld [vmem:[%s351_s1 + $0x88] sm:$0xff]  ;;  %v31_v5 = vld [vmem:[%s351_s1 + $0x90] sm:$0xff] }
   0x2   :  { %v13_v2 = vld [vmem:[%s351_s1] sm:$0xff]  ;;  %v166_v3 = vpack.c.bf16 %v30_v1, %v29_v0  ;;  %v14_v4 = vld [vmem:[%s351_s1 + $0x8] sm:$0xff]  ;;  %v32_v6 = vld [vmem:[%s351_s1 + $0x98] sm:$0xff] }
   0x3   :  { %v168_v7 = vpack.c.bf16 %v14_v4, %v13_v2  ;;  %v170_v8 = vpack.c.bf16 %v32_v6, %v31_v5  ;;  %v15_v9 = vld [vmem:[%s351_s1 + $0x10] sm:$0xff]  ;;  %v16_v10 = vld [vmem:[%s351_s1 + $0x18] sm:$0xff]  ;;  %v33_v11 = vld [vmem:[%s351_s1 + $0xa0] sm:$0xff] }
   0x4   :  { %167 = vmatprep.subr.bf16.mxu0 %v166_v3  ;;  %v34_v12 = vld [vmem:[%s351_s1 + $0xa8] sm:$0xff]  ;;  %v172_v13 = vpack.c.bf16 %v16_v10, %v15_v9  ;;  %v12_v15 = vld [vmem:[%s350_s0] sm:$0xff] }
   0x5   :  { %169 = vmatpush3.bf16.xpose.msra.mxu0 %v168_v7  ;;  %v174_v14 = vpack.c.bf16 %v34_v12, %v33_v11  ;;  %164 = vmatprep.mubr.f32.mxu0 %v12_v15 }
   0x6   :  { %171 = vmatprep.subr.bf16.mxu0 %v170_v8 }
   0x7   :  { %7 = vsyncpa [#allocation3], 0  ;;  %v17_v16 = vld [vmem:[%s351_s1 + $0x20] sm:$0xff]  ;;  %v18_v17 = vld [vmem:[%s351_s1 + $0x28] sm:$0xff]  ;;  %s223_s17 = smov [#allocation2]  }
   0x8   :  { %v35_v18 = vld [vmem:[%s351_s1 + $0xb0] sm:$0xff]  ;;  %v36_v19 = vld [vmem:[%s351_s1 + $0xb8] sm:$0xff]  ;;  %v176_v20 = vpack.c.bf16 %v18_v17, %v17_v16  ;;  %v37_v24 = vld [vmem:[%s351_s1 + $0xc0] sm:$0xff]  ;;  %s124_s18 = sshll.u32 %s223_s17, 4  ;;  %s125_s18 = int_to_ptr.vmem [resolvable:$true] %s124_s18 }
   0x9   :  { %v178_v21 = vpack.c.bf16 %v36_v19, %v35_v18  ;;  %v19_v22 = vld [vmem:[%s351_s1 + $0x30] sm:$0xff]  ;;  %v20_v23 = vld [vmem:[%s351_s1 + $0x38] sm:$0xff]  ;;  %v38_v25 = vld [vmem:[%s351_s1 + $0xc8] sm:$0xff]  ;;  %s199_s19 = scalar_lea.vmem %s125_s18, 256  ;;  %p204_p1 = scmp.lt.s32.totalorder %s125_s18, %s125_s18 }
   0xa   :  { %v180_v26 = vpack.c.bf16 %v20_v23, %v19_v22  ;;  %v182_v27 = vpack.c.bf16 %v38_v25, %v37_v24  ;;  %v21_v28 = vld [vmem:[%s351_s1 + $0x40] sm:$0xff]  ;;  %v22_v29 = vld [vmem:[%s351_s1 + $0x48] sm:$0xff]  ;;  %v39_v30 = vld [vmem:[%s351_s1 + $0xd0] sm:$0xff]  ;;  %p200_p0 = scmp.ne.s32.totalorder %s125_s18, %s199_s19  ;;  %p205_p2 = scmp.lt.s32.totalorder %s199_s19, %s199_s19 }
   0xb   :  { %v40_v31 = vld [vmem:[%s351_s1 + $0xd8] sm:$0xff]  ;;  %v184_v32 = vpack.c.bf16 %v22_v29, %v21_v28  ;;  %v23_v34 = vld [vmem:[%s351_s1 + $0x50] sm:$0xff]  ;;  %v41_v36 = vld [vmem:[%s351_s1 + $0xe0] sm:$0xff] }
   0xc   :  { %v186_v33 = vpack.c.bf16 %v40_v31, %v39_v30  ;;  %v24_v35 = vld [vmem:[%s351_s1 + $0x58] sm:$0xff]  ;;  %v42_v37 = vld [vmem:[%s351_s1 + $0xe8] sm:$0xff]  ;;  %v25_v40 = vld [vmem:[%s351_s1 + $0x60] sm:$0xff]  ;;  %p206_p3 = por %p205_p2, %p204_p1 }
   0xd   :  { %173 = vmatpush3.bf16.xpose.msra.mxu0 %v172_v13  ;;  %v188_v38 = vpack.c.bf16 %v24_v35, %v23_v34  ;;  %v190_v39 = vpack.c.bf16 %v42_v37, %v41_v36  ;;  %v26_v41 = vld [vmem:[%s351_s1 + $0x68] sm:$0xff]  ;;  %v43_v42 = vld [vmem:[%s351_s1 + $0xf0] sm:$0xff]  ;;  %v44_v43 = vld [vmem:[%s351_s1 + $0xf8] sm:$0xff] }
   0xe   :  { %175 = vmatprep.subr.bf16.mxu0 %v174_v14  ;;  %v192_v44 = vpack.c.bf16 %v26_v41, %v25_v40  ;;  %v194_v45 = vpack.c.bf16 %v44_v43, %v43_v42  ;;  %v27_v46 = vld [vmem:[%s351_s1 + $0x70] sm:$0xff]  ;;  %v28_v47 = vld [vmem:[%s351_s1 + $0x78] sm:$0xff]  ;;  %p207_p4 = pnand %p206_p3, %p200_p0 }
   0xf   :  { %v196_v48 = vpack.c.bf16 %v28_v47, %v27_v46 }
  0x15   :  { %177 = vmatpush3.bf16.xpose.msra.mxu0 %v176_v20 }
  0x16   :  { %179 = vmatprep.subr.bf16.mxu0 %v178_v21 }
  0x1d   :  { %181 = vmatpush3.bf16.xpose.msra.mxu0 %v180_v26 }
  0x1e   :  { %183 = vmatprep.subr.bf16.mxu0 %v182_v27 }
  0x25   :  { %185 = vmatpush3.bf16.xpose.msra.mxu0 %v184_v32 }
  0x26   :  { %187 = vmatprep.subr.bf16.mxu0 %v186_v33 }
  0x2d   :  { %189 = vmatpush3.bf16.xpose.msra.mxu0 %v188_v38 }
  0x2e   :  { %191 = vmatprep.subr.bf16.mxu0 %v190_v39 }
  0x35   :  { %193 = vmatpush3.bf16.xpose.msra.mxu0 %v192_v44 }
  0x36   :  { %195 = vmatprep.subr.bf16.mxu0 %v194_v45 }
  0x3d   :  { %197 = vmatpush3.bf16.xpose.msra.mxu0 %v196_v48 }
  0x44   :  { %165 = vmatmul.mubr.f32.vlgmr.msra.gmra.mrb[0].mxu0 %v12_v15 }
 0x117   :  { %v111_v49 = vpop.f32.mrb[0].mxu0 }
 0x118   :  { %116 = vst [vmem:[#allocation2] sm:$0xff] %v111_v49  ;;  %v113_v50 = vpop.f32.mrb[1].mxu0 }
 0x119   :  { %117 = vst [vmem:[#allocation2 + $0x8] sm:$0xff] %v113_v50 }
 0x11a   :  { %210 = shalt.err (!%p207_p4)
}
 0x11b   :  { %s211_s1 = scalar_lea.hbm %s352_s2, 256 }
 0x11c   :  { %p212_p5 = scmp.ne.s32.totalorder %s352_s2, %s211_s1  ;;  %p215_p6 = scmp.lt.u32.totalorder %s211_s1, %s352_s2 }
 0x11e   :  { %p217_p7 = pnand %p215_p6, %p212_p5 }
 0x120   :  { %220 = shalt.err (!%p217_p7)
}
 0x121   :  { %127 = dma.vmem_to_hbm [thread:$0]  %s125_s18, 256, %s352_s2, [#allocation3]  }
 0x122   :  { %221 = dma.done.wait [#allocation3], 256  }
 0x123   :  { %222 = vsyncadd [#allocation3], 4294967040 }
 0x124   :  { %131 = vsyncpa [#allocation3], 1 }

</bundles_post_ra>
